<compile_context>
chip_gen: v5e
topology: v5e:2x2
jax: 0.10.0
libtpu: 0.0.40
codegen_flags: <defaults>
</compile_context>

<pallas_src>
import functools

import jax
import jax.numpy as jnp
from jax.experimental import pallas as pl
from jax.experimental.pallas import tpu as pltpu


def _round_up(n, m):
    return ((n + m - 1) // m) * m


def _ensemble_kernel(x_ref, w_ref, b_ref, o_ref, *, num_models, c_pad):
    # One MXU matmul for all sub-models: [TB, H] @ [H, M*Cp] -> [TB, M*Cp].
    logits = jnp.dot(x_ref[...], w_ref[...], preferred_element_type=jnp.float32)

    # Ensemble mean over the M model groups: static, 128-lane-aligned slices
    # summed on the VPU, then scaled by a precomputed 1/M.
    acc = logits[:, :c_pad]
    for m in range(1, num_models):
        acc = acc + logits[:, m * c_pad:(m + 1) * c_pad]

    inv_m = jnp.float32(1.0 / num_models)
    o_ref[...] = (acc * inv_m + b_ref[...]).astype(o_ref.dtype)


def average_ensemble(x, weights, biases, *, batch_tile=256):
    """x: [B, H]; weights: [M, H, C]; biases: [M, C] -> mean_m(x @ W_m + b_m): [B, C]."""
    B, H = x.shape
    M, Hw, C = weights.shape
    assert Hw == H and biases.shape == (M, C)

    # Lane-dense class dim: pad C up to a multiple of 128 per model group.
    c_pad = _round_up(C, 128)

    # Pack weights as Wp[h, m*Cp + c] = W[m, h, c]  (zero beyond C).
    wp = jnp.zeros((H, M, c_pad), dtype=weights.dtype)
    wp = wp.at[:, :, :C].set(jnp.transpose(weights, (1, 0, 2)))
    wp = wp.reshape(H, M * c_pad)

    # Pre-averaged bias (mean is linear), zero-padded to the lane-dense slab.
    b_mean = jnp.mean(biases.astype(jnp.float32), axis=0)
    b_pad = jnp.zeros((1, c_pad), jnp.float32).at[0, :C].set(b_mean)

    # Batch tiling: a "parallel" grid axis (both TensorCores on v7x when the
    # batch is large); pad the batch to a sublane/tile multiple.
    tb = min(batch_tile, _round_up(B, 8))
    b_padded = _round_up(B, tb)
    x_pad = jnp.zeros((b_padded, H), dtype=x.dtype).at[:B].set(x)

    kernel = functools.partial(_ensemble_kernel, num_models=M, c_pad=c_pad)

    out = pl.pallas_call(
        kernel,
        out_shape=jax.ShapeDtypeStruct((b_padded, c_pad), x.dtype),
        grid_spec=pltpu.PrefetchScalarGridSpec(
            num_scalar_prefetch=0,
            grid=(b_padded // tb,),
            in_specs=[
                pl.BlockSpec((tb, H), lambda i: (i, 0)),           # x batch tile
                pl.BlockSpec((H, M * c_pad), lambda i: (0, 0)),    # packed weights (resident)
                pl.BlockSpec((1, c_pad), lambda i: (0, 0)),        # mean bias (resident)
            ],
            out_specs=pl.BlockSpec((tb, c_pad), lambda i: (i, 0)),
        ),
        compiler_params=pltpu.CompilerParams(
            dimension_semantics=("parallel",),
        ),
    )(x_pad, wp, b_pad)

    return out[:B, :C]


def average_ensemble_ref(x, weights, biases):
    # torch.mean(torch.stack([model(x) for model in models]), 0)
    outs = jnp.einsum("bh,mhc->mbc", x, weights) + biases[:, None, :]
    return jnp.mean(outs, axis=0).astype(x.dtype)


if __name__ == "__main__":
    key = jax.random.PRNGKey(0)
    B, H, C, M = 8, 32, 4, 3  # batch, hidden, num_classes, num_models

    kx, kw, kb = jax.random.split(key, 3)
    x = jax.random.normal(kx, (B, H), dtype=jnp.float32)
    weights = jax.random.normal(kw, (M, H, C), dtype=jnp.float32) * 0.1
    biases = jax.random.normal(kb, (M, C), dtype=jnp.float32) * 0.1

    out = average_ensemble(x, weights, biases)
    out = jax.block_until_ready(out)

    ref = average_ensemble_ref(x, weights, biases)
    assert out.shape == (B, C), out.shape
    assert jnp.allclose(out, ref, atol=1e-4, rtol=1e-4), (out, ref)

    print("KERNEL_OK")
</pallas_src>

<mosaic_0001>
module attributes {stable_mosaic.version = 11 : i64} {
  func.func @_ensemble_kernel(%arg0: i32, %arg1: memref<8x32xf32, #tpu.memory_space<vmem>>, %arg2: memref<32x384xf32, #tpu.memory_space<vmem>>, %arg3: memref<1x128xf32, #tpu.memory_space<vmem>>, %arg4: memref<8x128xf32, #tpu.memory_space<vmem>>) attributes {dimension_semantics = [#tpu.dimension_semantics<parallel>], iteration_bounds = array<i64: 1>, scalar_prefetch = 0 : i64, scratch_operands = 0 : i64, tpu.core_type = #tpu.core_type<tc>, window_params = [{transform_indices = @transform_0, window_bounds = array<i64: 8, 32>}, {pipeline_mode = #tpu.pipeline_mode<synchronous>, transform_indices = @transform_1, window_bounds = array<i64: 32, 384>}, {pipeline_mode = #tpu.pipeline_mode<synchronous>, transform_indices = @transform_2, window_bounds = array<i64: 1, 128>}, {transform_indices = @transform_3, window_bounds = array<i64: 8, 128>}]} {
    %c0 = arith.constant 0 : index
    %c0_0 = arith.constant 0 : index
    %0 = vector.load %arg1[%c0, %c0_0] : memref<8x32xf32, #tpu.memory_space<vmem>>, vector<8x32xf32>
    %c0_1 = arith.constant 0 : index
    %c0_2 = arith.constant 0 : index
    %1 = vector.load %arg2[%c0_1, %c0_2] : memref<32x384xf32, #tpu.memory_space<vmem>>, vector<32x384xf32>
    %cst = arith.constant dense<0.000000e+00> : vector<8x384xf32>
    %2 = tpu.matmul %0, %1, %cst {dimension_numbers = #tpu.dot_dimension_numbers<[1], [0], [0], [1], [0, 0, 1, 1], [], []>} : vector<8x32xf32>, vector<32x384xf32>, vector<8x384xf32> -> vector<8x384xf32>
    %3 = vector.extract_strided_slice %2 {offsets = [0, 0], sizes = [8, 128], strides = [1, 1]} : vector<8x384xf32> to vector<8x128xf32>
    %4 = vector.extract_strided_slice %2 {offsets = [0, 128], sizes = [8, 128], strides = [1, 1]} : vector<8x384xf32> to vector<8x128xf32>
    %5 = arith.addf %3, %4 : vector<8x128xf32>
    %6 = vector.extract_strided_slice %2 {offsets = [0, 256], sizes = [8, 128], strides = [1, 1]} : vector<8x384xf32> to vector<8x128xf32>
    %7 = arith.addf %5, %6 : vector<8x128xf32>
    %cst_3 = arith.constant 0.333333343 : f32
    %8 = vector.broadcast %cst_3 : f32 to vector<8x128xf32>
    %9 = arith.mulf %7, %8 : vector<8x128xf32>
    %c0_4 = arith.constant 0 : index
    %c0_5 = arith.constant 0 : index
    %10 = vector.load %arg3[%c0_4, %c0_5] : memref<1x128xf32, #tpu.memory_space<vmem>>, vector<1x128xf32>
    %11 = vector.broadcast %10 : vector<1x128xf32> to vector<8x128xf32>
    %12 = arith.addf %9, %11 : vector<8x128xf32>
    %c0_6 = arith.constant 0 : index
    %c0_7 = arith.constant 0 : index
    %13 = vector.load %arg4[%c0_6, %c0_7] : memref<8x128xf32, #tpu.memory_space<vmem>>, vector<8x128xf32>
    tpu.vector_store %arg4[%c0_6, %c0_7], %12 {strides = array<i32>} : memref<8x128xf32, #tpu.memory_space<vmem>>, vector<8x128xf32>,
    return
  }
  func.func @transform_0(%arg0: i32) -> (i32, i32) {
    %c0_i32 = arith.constant 0 : i32
    %c0_i32_0 = arith.constant 0 : i32
    return %arg0, %c0_i32 : i32, i32
  }
  func.func @transform_1(%arg0: i32) -> (i32, i32) {
    %c0_i32 = arith.constant 0 : i32
    %c0_i32_0 = arith.constant 0 : i32
    %c0_i32_1 = arith.constant 0 : i32
    return %c0_i32, %c0_i32_0 : i32, i32
  }
  func.func @transform_2(%arg0: i32) -> (i32, i32) {
    %c0_i32 = arith.constant 0 : i32
    %c0_i32_0 = arith.constant 0 : i32
    %c0_i32_1 = arith.constant 0 : i32
    return %c0_i32, %c0_i32_0 : i32, i32
  }
  func.func @transform_3(%arg0: i32) -> (i32, i32) {
    %c0_i32 = arith.constant 0 : i32
    %c0_i32_0 = arith.constant 0 : i32
    return %arg0, %c0_i32 : i32, i32
  }
}

</mosaic_0001>

<bundles_post_ra>
// kernel: tpu_custom_call.1
= control target key start
LH: loop header
LB: loop body
LE: loop exit
PB: predicated region body
PF: predicated region fallthrough
CT: control target
= control target key end

     0   :  { %8 = vsyncpa [#allocation3], 0  ;;  %s273_s0 = inlined_call_operand.hbm [shape: f32[8,32], index: 0, kind: input, shape index: {}]   ;;  %s274_s1 = inlined_call_operand.hbm [shape: f32[32,384], index: 1, kind: input, shape index: {}]   ;;  %s275_s2 = inlined_call_operand.vmem [shape: f32[1,128], index: 2, kind: input, shape index: {}]   ;;  %s276_s3 = inlined_call_operand.hbm [shape: f32[8,128], index: 3, kind: output, shape index: {}]  }
   0x1   :  { %9 = vsyncpa [#allocation6], 0 }
   0x2   :  { %10 = vsyncpa [#allocation4], 0  ;;  %s16_s14 = sshll.u32 %s273_s0, 4  ;;  %s236_s15 = smov [#allocation2]   ;;  %s17_s14 = int_to_ptr.hbm [resolvable:$true] %s16_s14 }
   0x3   :  { %s18_s16 = sshll.u32 %s236_s15, 4  ;;  %s26_s19 = sshll.u32 %s274_s1, 4  ;;  %s19_s16 = int_to_ptr.vmem [resolvable:$true] %s18_s16  ;;  %s27_s19 = int_to_ptr.hbm [resolvable:$true] %s26_s19 }
   0x4   :  { %21 = dma.hbm_to_vmem [thread:$0]  %s17_s14, 128, %s19_s16, [#allocation3]  }
   0x5   :  { %s237_s20 = smov [#allocation5]   ;;  %s238_s22 = smov 384  }
   0x6   :  { %s28_s21 = sshll.u32 %s237_s20, 4  ;;  %s239_s23 = smov 24   ;;  %s29_s21 = int_to_ptr.vmem [resolvable:$true] %s28_s21 }
   0x7   :  { %34 = dma.hbm_to_vmem [thread:$0]  %s27_s19, 1536, %s29_s21, [#allocation6], %s238_s22, %s238_s22, %s239_s23  }
   0x8   :  { %230 = dma.done.wait [#allocation3], 128  }
   0x9   :  { %231 = vsyncadd [#allocation3], 4294967168 }
   0xa   :  { %232 = dma.done.wait [#allocation6], 1536  }
   0xb   :  { %233 = vsyncadd [#allocation6], 4294965760  ;;  %v57_v0 = vld [vmem:[#allocation5 + $0x58] sm:$0xff]  ;;  %v54_v1 = vld [vmem:[#allocation5 + $0x40] sm:$0xff]  ;;  %vm58_vm0 = vcmask 261120   ;;  %s240_s24 = smov [#allocation7]  }
   0xc   :  { %v55_v2 = vld [vmem:[#allocation5 + $0x48] sm:$0xff]  ;;  %114 = vmatpush.msra.mxu2 %v57_v0  ;;  %v56_v3 = vld [vmem:[#allocation5 + $0x50] sm:$0xff]  ;;  %v53_v6 = vld [vmem:[#allocation5 + $0x38] sm:$0xff]  ;;  %s136_s25 = sshll.u32 %s240_s24, 4  ;;  %s138_s28 = sshll.u32 %s276_s3, 4  ;;  %s137_s25 = int_to_ptr.vmem [resolvable:$true] %s136_s25  ;;  %s139_s28 = int_to_ptr.hbm [resolvable:$true] %s138_s28 }
   0xd   :  { %74 = vmatpush.msra.mxu0 %v55_v2  ;;  %v52_v4 = vld [vmem:[#allocation5 + $0x30] sm:$0xff]  ;;  %94 = vmatpush.msra.mxu1 %v56_v3  ;;  %v51_v5 = vld [vmem:[#allocation5 + $0x28] sm:$0xff]  ;;  %v49_v7 = vld [vmem:[#allocation5 + $0x18] sm:$0xff] }
   0xe   :  { %115 = vmatpush.msra.mxu2 %v54_v1  ;;  %v50_v8 = vld [vmem:[#allocation5 + $0x20] sm:$0xff]  ;;  %v48_v9 = vld [vmem:[#allocation5 + $0x10] sm:$0xff]  ;;  %v45_v11 = vld [vmem:[#allocation2] sm:$0xff] }
   0xf   :  { %75 = vmatpush.msra.mxu0 %v52_v4  ;;  %95 = vmatpush.msra.mxu1 %v53_v6  ;;  %v46_v10 = vld [vmem:[#allocation5] sm:$0xff]  ;;  %v47_v12 = vld [vmem:[#allocation5 + $0x8] sm:$0xff]  ;;  %v157_v18 = vld [vmem:[%s275_s2] ss:$0 sm:$0xff] }
  0x10   :  { %116 = vmatpush.msra.mxu2 %v51_v5 }
  0x11   :  { %76 = vmatpush.msra.mxu0 %v49_v7  ;;  %96 = vmatpush.msra.mxu1 %v50_v8 }
  0x12   :  { %117 = vmatpush.msra.mxu2 %v48_v9 }
  0x13   :  { %77 = vmatpush.msra.mxu0 %v46_v10  ;;  %151 = vmatmul.msk.f32.vlgmr.msra.gmra.mxu2 %vm58_vm0, %v45_v11 }
  0x14   :  { %97 = vmatpush.msra.mxu1 %v47_v12  ;;  %149 = vmatmul.msk.f32.vlgmr.msra.gmra.mxu0 %vm58_vm0, %v45_v11 }
  0x15   :  { %150 = vmatmul.msk.f32.vlgmr.msra.gmra.mxu1 %vm58_vm0, %v45_v11 }
  0x91   :  { %v79_v13 = vpop.f32.mrf.mxu0 }
  0x92   :  { %v99_v14 = vpop.f32.mrf.mxu1 }
  0x93   :  { %v122_v15 = vadd.f32 %v99_v14, %v79_v13 }
  0x96   :  { %v119_v16 = vpop.f32.mrf.mxu2 }
  0x97   :  { %v123_v17 = vadd.f32 %v122_v15, %v119_v16 }
  0x99   :  { %v124_v19 = vmul.f32 0.33333334, %v123_v17 }
  0x9b   :  { %v129_v20 = vadd.f32 %v157_v18, %v124_v19 }
  0x9d   :  { %130 = vst [vmem:[#allocation7] sm:$0xff] %v129_v20 }
  0x9e   :  { %141 = dma.vmem_to_hbm [thread:$0]  %s137_s25, 128, %s139_s28, [#allocation4]  }
  0x9f   :  { %234 = dma.done.wait [#allocation4], 128  }
  0xa0   :  { %235 = vsyncadd [#allocation4], 4294967168 }
  0xa1   :  { %146 = vsyncpa [#allocation3], 1 }
  0xa2   :  { %147 = vsyncpa [#allocation6], 1 }
  0xa3   :  { %148 = vsyncpa [#allocation4], 1 }

</bundles_post_ra>
